<compile_context>
chip_gen: v6e
topology: v6e:2x2x1
jax: 0.10.0
libtpu: 0.0.40
codegen_flags: <defaults>
</compile_context>

<pallas_src>
import functools

import jax
import jax.numpy as jnp
from jax.experimental import pallas as pl
from jax.experimental.pallas import tpu as pltpu


def _round_up(x: int, m: int) -> int:
    return ((x + m - 1) // m) * m


def _tpu_vmem_capacity_bytes() -> int:
    """Physical per-core VMEM; conservative 64 MiB (v7x-sized) fallback."""
    try:
        info = pltpu.get_tpu_info()
        cap = int(getattr(info, "vmem_capacity_bytes", 0))
        if cap > 0:
            return cap
    except Exception:
        pass
    return 64 << 20


# ----------------------------- kernel bodies ------------------------------ #

def _corrnet_single_kernel(x_ref, o_ref, *, inv_t, scale, mm_dtype):
    # x_ref: (B, K, t) — full contraction slab.  o_ref: (B, t, t).
    feat32 = x_ref[...].astype(jnp.float32)
    mean = jnp.sum(feat32, axis=-1, keepdims=True) * inv_t
    centered = (feat32 - mean).astype(mm_dtype)     # bf16 stays bf16 for the MXU
    gram = jnp.einsum("bkt,bks->bts", centered, centered,
                      preferred_element_type=jnp.float32)
    o_ref[...] = (gram * scale).astype(o_ref.dtype)


def _corrnet_tiled_kernel(x_ref, o_ref, acc_ref, *, inv_t, scale, mm_dtype,
                          tk, k_total):
    # x_ref: (B, tk, t) K-tile.  o_ref/acc_ref: (B, t, t), resident across K.
    k = pl.program_id(1)

    @pl.when(k == 0)
    def _init():
        acc_ref[...] = jnp.zeros_like(acc_ref)

    feat = x_ref[...]
    if k_total % tk != 0:
        # Static check: only emit tail masking when K is not a multiple of tk.
        # OOB rows of the last (partial) block are undefined; zeroed rows have
        # zero mean and contribute nothing to the Gram.
        row = jax.lax.broadcasted_iota(jnp.int32, feat.shape, dimension=1)
        feat = jnp.where(k * tk + row < k_total, feat, jnp.zeros_like(feat))

    feat32 = feat.astype(jnp.float32)
    mean = jnp.sum(feat32, axis=-1, keepdims=True) * inv_t
    centered = (feat32 - mean).astype(mm_dtype)
    acc_ref[...] += jnp.einsum("bkt,bks->bts", centered, centered,
                               preferred_element_type=jnp.float32)

    @pl.when(k == pl.num_programs(1) - 1)
    def _finalize():
        o_ref[...] = (acc_ref[...] * scale).astype(o_ref.dtype)


# -------------------------------- wrapper ---------------------------------- #

def corrnet_forward(x: jax.Array) -> jax.Array:
    """x: (n, c, t, v) -> (n, t, t), matching CorrNet.forward."""
    n, c, t, v = x.shape
    K = c * v
    feat = x.reshape(n, K, t)                 # identical to torch .view(n, c*v, t)
    scale = (1.0 / (c ** 0.5)) / float(c * v)
    inv_t = 1.0 / float(t)

    itemsize = jnp.dtype(x.dtype).itemsize
    mm_dtype = jnp.bfloat16 if x.dtype == jnp.bfloat16 else jnp.float32

    # ---- layout-aware VMEM accounting (lane pads to 128, sublane per dtype) ----
    sub_in = max(8, 32 // itemsize)           # 8 for f32, 16 for bf16, 32 for i8
    t_lane = _round_up(t, 128)
    t_sub = _round_up(t, sub_in)

    def per_b_in(tk: int) -> int:
        tk_in = _round_up(tk, sub_in)
        tk32 = _round_up(tk, 8)
        b = 2 * tk_in * t_lane * itemsize     # double-buffered DMA slab
        b += 2 * tk32 * t_lane * 4            # f32 upcast + centered temporaries
        if itemsize < 4:
            b += tk_in * t_lane * itemsize    # cast-back copy fed to the MXU
        return b

    def per_b_out(tiled: bool) -> int:
        b = 2 * t_sub * t_lane * itemsize     # double-buffered output block
        if tiled:
            b += _round_up(t, 8) * t_lane * 4  # f32 accumulator scratch
        return b

    vmem_cap = _tpu_vmem_capacity_bytes()
    budget = int(vmem_cap * 0.65)             # ~42 MiB on v7x, ~83 MiB on v5e/v6e

    # ---- K tiling decision: single step if a full-K slab fits the budget ----
    if per_b_in(K) + per_b_out(False) <= budget:
        tiled, tk = False, K
    else:
        tiled, tk = True, 8
        for cand in (2048, 1024, 512, 256, 128, 64, 32, 16, 8):
            if cand <= K and per_b_in(cand) + per_b_out(True) <= budget:
                tk = cand
                break

    per_b = per_b_in(tk) + per_b_out(tiled)

    # ---- batch block B: amortize per-step overhead (HBM-bound kernel); keep
    #      >= 2 batch steps so both v7x TensorCores get work on the parallel axis.
    B = 1
    for b in range(1, min(n, 32) + 1):
        if n % b != 0:
            continue
        if n >= 2 and n // b < 2:
            continue
        if b * per_b <= budget:
            B = b

    footprint = B * per_b
    vmem_limit = min(int(vmem_cap * 0.9), max(footprint + (8 << 20), 32 << 20))

    cost = pl.CostEstimate(
        flops=2 * n * K * t * t + 3 * n * K * t,
        transcendentals=0,
        bytes_accessed=n * K * t * itemsize + n * t * t * itemsize,
    )

    if not tiled:
        kernel = functools.partial(_corrnet_single_kernel,
                                   inv_t=inv_t, scale=scale, mm_dtype=mm_dtype)
        grid = (n // B,)
        in_specs = [pl.BlockSpec((B, K, t), lambda b: (b, 0, 0))]
        out_specs = pl.BlockSpec((B, t, t), lambda b: (b, 0, 0))
        scratch_shapes = []
        dims = ("parallel",)
    else:
        kernel = functools.partial(_corrnet_tiled_kernel,
                                   inv_t=inv_t, scale=scale, mm_dtype=mm_dtype,
                                   tk=tk, k_total=K)
        grid = (n // B, (K + tk - 1) // tk)
        in_specs = [pl.BlockSpec((B, tk, t), lambda b, k: (b, k, 0))]
        out_specs = pl.BlockSpec((B, t, t), lambda b, k: (b, 0, 0))
        scratch_shapes = [pltpu.VMEM((B, t, t), jnp.float32)]
        dims = ("parallel", "arbitrary")

    return pl.pallas_call(
        kernel,
        out_shape=jax.ShapeDtypeStruct((n, t, t), x.dtype),
        grid_spec=pltpu.PrefetchScalarGridSpec(
            num_scalar_prefetch=0,
            grid=grid,
            in_specs=in_specs,
            out_specs=out_specs,
            scratch_shapes=scratch_shapes,
        ),
        compiler_params=pltpu.CompilerParams(
            dimension_semantics=dims,
            vmem_limit_bytes=vmem_limit,
        ),
        cost_estimate=cost,
    )(feat)


# ------------------------------- reference --------------------------------- #

def _reference(x: jax.Array) -> jax.Array:
    n, c, t, v = x.shape
    feat = x.reshape(n, c * v, t)
    feat = feat - feat.mean(axis=2, keepdims=True)
    corr = jnp.einsum("nkt,nks->nts", feat, feat,
                      precision=jax.lax.Precision.HIGHEST) * (1.0 / (c ** 0.5))
    return corr / (c * v)


if __name__ == "__main__":
    key = jax.random.PRNGKey(0)
    n, c, t, v = 2, 4, 16, 16
    x = jax.random.normal(key, (n, c, t, v), dtype=jnp.float32)

    out = jax.block_until_ready(corrnet_forward(x))

    ref = _reference(x)
    assert out.shape == (n, t, t), out.shape
    # Tolerance covers MXU f32 matmul pass behavior (default precision).
    assert jnp.allclose(out, ref, atol=2e-3, rtol=2e-3), float(
        jnp.max(jnp.abs(out - ref)))

    print("KERNEL_OK")
</pallas_src>

<mosaic_0001>
module attributes {stable_mosaic.version = 11 : i64} {
  func.func @_corrnet_single_kernel(%arg0: i32, %arg1: memref<1x64x16xf32, #tpu.memory_space<vmem>>, %arg2: memref<1x16x16xf32, #tpu.memory_space<vmem>>) attributes {dimension_semantics = [#tpu.dimension_semantics<parallel>], iteration_bounds = array<i64: 2>, scalar_prefetch = 0 : i64, scratch_operands = 0 : i64, tpu.core_type = #tpu.core_type<tc>, window_params = [{transform_indices = @transform_0, window_bounds = array<i64: 1, 64, 16>}, {transform_indices = @transform_1, window_bounds = array<i64: 1, 16, 16>}]} {
    %c0 = arith.constant 0 : index
    %c0_0 = arith.constant 0 : index
    %c0_1 = arith.constant 0 : index
    %0 = vector.load %arg1[%c0, %c0_0, %c0_1] : memref<1x64x16xf32, #tpu.memory_space<vmem>>, vector<1x64x16xf32>
    %cst = arith.constant dense<0.000000e+00> : vector<1x64xf32>
    %1 = vector.multi_reduction <add>, %0, %cst [2] : vector<1x64x16xf32> to vector<1x64xf32>
    %2 = vector.shape_cast %1 : vector<1x64xf32> to vector<1x64x1xf32>
    %cst_2 = arith.constant 6.250000e-02 : f32
    %3 = vector.broadcast %cst_2 : f32 to vector<1x64x1xf32>
    %4 = arith.mulf %2, %3 : vector<1x64x1xf32>
    %5 = vector.broadcast %4 : vector<1x64x1xf32> to vector<1x64x16xf32>
    %6 = arith.subf %0, %5 : vector<1x64x16xf32>
    "tpu.trace_start"() <{level = 10 : i32, message = "bkt,bks->bts"}> : () -> ()
    %cst_3 = arith.constant dense<0.000000e+00> : vector<1x16x16xf32>
    %7 = tpu.matmul %6, %6, %cst_3 {dimension_numbers = #tpu.dot_dimension_numbers<[1], [1], [2], [2], [0, 0, 0, 2, 1, 2], [0], [0]>} : vector<1x64x16xf32>, vector<1x64x16xf32>, vector<1x16x16xf32> -> vector<1x16x16xf32>
    "tpu.trace_stop"() : () -> ()
    %cst_4 = arith.constant 7.812500e-03 : f32
    %8 = vector.broadcast %cst_4 : f32 to vector<1x16x16xf32>
    %9 = arith.mulf %7, %8 : vector<1x16x16xf32>
    %c0_5 = arith.constant 0 : index
    %c0_6 = arith.constant 0 : index
    %c0_7 = arith.constant 0 : index
    %10 = vector.load %arg2[%c0_5, %c0_6, %c0_7] : memref<1x16x16xf32, #tpu.memory_space<vmem>>, vector<1x16x16xf32>
    tpu.vector_store %arg2[%c0_5, %c0_6, %c0_7], %9 {strides = array<i32>} : memref<1x16x16xf32, #tpu.memory_space<vmem>>, vector<1x16x16xf32>,
    return
  }
  func.func @transform_0(%arg0: i32) -> (i32, i32, i32) {
    %c0_i32 = arith.constant 0 : i32
    %c0_i32_0 = arith.constant 0 : i32
    %c0_i32_1 = arith.constant 0 : i32
    return %arg0, %c0_i32, %c0_i32_0 : i32, i32, i32
  }
  func.func @transform_1(%arg0: i32) -> (i32, i32, i32) {
    %c0_i32 = arith.constant 0 : i32
    %c0_i32_0 = arith.constant 0 : i32
    %c0_i32_1 = arith.constant 0 : i32
    return %arg0, %c0_i32, %c0_i32_0 : i32, i32, i32
  }
}

</mosaic_0001>

<bundles_post_ra>
// kernel: tpu_custom_call.1
= control target key start
LH: loop header
LB: loop body
LE: loop exit
PB: predicated region body
PF: predicated region fallthrough
CT: control target
= control target key end

     0   :  { %6 = vsyncpa [#allocation3], 0  ;;  %s632_s0 = inlined_call_operand.vmem [shape: f32[2,64,16], index: 0, kind: input, shape index: {}]   ;;  %s633_s1 = inlined_call_operand.hbm [shape: f32[2,16,16], index: 1, kind: output, shape index: {}]  }
   0x1   :  { %8 = vsyncpa [#allocation3 + $0x1], 0  ;;  %s520_s6 = smov 0   ;;  %s522_s7 = smov 0  }
   0x2   :  { %s524_s8 = smov 0   ;;  %s526_s9 = smov 0  }
   0x3 LB: > { %s541_s10 = sadd.s32 4294967295, %s505_s9   ;;  %s358_s11 = sadd.s32 4294967294, %s505_s9   ;;  %s505_s9 = sphi %s526_s9, %s639_s9   ;;  %s501_s8 = sphi %s524_s8, %s638_s8   ;;  %s497_s7 = sphi %s522_s7, %s637_s7   ;;  %s493_s6 = sphi %s520_s6, %s636_s6  }
   0x4   : > { %s545_s12 = sadd.s32 1, %s505_s9   ;;  %s47_s13 = sadd.s32 1, %s501_s8 }
   0x5   : > { %s44_s14 = ssub.s32 %s505_s9, %s545_s12  ;;  %p57_p0 = scmp.ne.s32.totalorder %s501_s8, %s497_s7 }
   0x6   : > { %p45_p1 = scmp.eq.s32.totalorder %s44_s14, 0  ;;  %p58_p2 = scmp.eq.s32.totalorder %s541_s10, 1 }
   0x7   : > { %p63_p3 = scmp.ne.s32.totalorder %s497_s7, %s493_s6  ;;  %p64_p4 = scmp.eq.s32.totalorder %s358_s11, 1 }
   0x8   : > { %s556_s15 = scalar_select %p45_p1, %s501_s8, %s47_s13  }
   0x9   : > { %p558_p5 = por %p58_p2, %p57_p0  ;;  %p562_p6 = por %p64_p4, %p63_p3 }
   0xa   : > { %p361_p7 = scmp.ge.s32.totalorder %s505_s9, 1  ;;  %p90_p8 = scmp.lt.s32.totalorder %s505_s9, 3 }
   0xc   : > { %p91_p9 = pnand %p361_p7, %p90_p8 }
   0xd   : > { %p110_p10 = scmp.lt.s32.totalorder (!%p91_p9), %s541_s10, 1  ;;  %s107_s23 = sand.u32 (!%p91_p9), 1, %s497_s7  }
   0xe   : > { %94 = sbr.rel (%p91_p9) target bundleno = 507 (0x1fb), region = 24  ;;  %s362_s24 = sshll.u32 (!%p91_p9), %s107_s23, 4 }
   0xf   : > { %s109_s25 = scalar_lea.vmem (!%p91_p9), [#allocation2], %s362_s24  ;;  %s373_s27 = sshll.u32 (!%p91_p9), %s541_s10, 8 }
  0x10   : > { %s296_s26 = sshll.u32 (!%p91_p9), %s109_s25, 4  ;;  %s588_s30 = scalar_lea.hbm (!%p91_p9), %s633_s1, %s373_s27  ;;  %s583_s26 = int_to_ptr.vmem [resolvable:$true] %s296_s26 }
  0x11   : > { %s592_s2 = scalar_lea.sflag (!%p91_p9), [#allocation3], %s107_s23  ;;  %s445_s3 = scalar_lea.vmem (!%p91_p9), %s583_s26, 256 }
  0x12   : > { %p446_p11 = scmp.ne.s32.totalorder (!%p91_p9), %s583_s26, %s445_s3  ;;  %s507_s4 = smov (!%p91_p9), [#allocation2]  }
  0x13   : > { %s111_s18 = scalar_select %p110_p10, %s541_s10, 1  ;;  %vm123_vm0 = vcmask 130048   ;;  %vm196_vm1 = vcmask 523264  }
  0x14   : > { %p447_p12 = pnand %p446_p11, %p558_p5  ;;  %s449_s5 = sshll.u32 %s507_s4, 4  ;;  %s450_s5 = int_to_ptr.vmem [resolvable:$false] %s449_s5 }
  0x15   : > { %s372_s19 = sshll.u32 %s111_s18, 6  ;;  %s451_s10 = scalar_lea.vmem %s450_s5, 512 }
  0x16   : > { %s114_s22 = scalar_lea.vmem %s632_s0, %s372_s19  ;;  %p448_p13 = pneg %p447_p12 }
  0x17   : > { %v117_v0 = vld [vmem:[%s114_s22 + $0x10] sm:$0xff]  ;;  %v115_v1 = vld [vmem:[%s114_s22] sm:$0xff]  ;;  %v118_v2 = vld [vmem:[%s114_s22 + $0x18] sm:$0xff]  ;;  %p452_p0 = scmp.lt.s32.totalorder %s583_s26, %s450_s5  ;;  %p453_p1 = scmp.lt.s32.totalorder %s451_s10, %s445_s3 }
  0x18   : > { %v130_v3 = vsel %vm123_vm0, %v117_v0, 0.0  ;;  %v124_v4 = vsel %vm123_vm0, %v115_v1, 0.0  ;;  %v116_v5 = vld [vmem:[%s114_s22 + $0x8] sm:$0xff]  ;;  %v133_v6 = vsel %vm123_vm0, %v118_v2, 0.0  ;;  %v119_v9 = vld [vmem:[%s114_s22 + $0x20] sm:$0xff]  ;;  %v122_v12 = vld [vmem:[%s114_s22 + $0x38] sm:$0xff] }
  0x19   : > { %131 = vadd.xlane.f32.xlu1 %v130_v3  ;;  %125 = vadd.xlane.f32.xlu0 %v124_v4  ;;  %v127_v7 = vsel %vm123_vm0, %v116_v5, 0.0  ;;  %v120_v8 = vld [vmem:[%s114_s22 + $0x28] sm:$0xff]  ;;  %v136_v11 = vsel %vm123_vm0, %v119_v9, 0.0  ;;  %v121_v13 = vld [vmem:[%s114_s22 + $0x30] sm:$0xff]  ;;  %v145_v14 = vsel %vm123_vm0, %v122_v12, 0.0  ;;  %p454_p2 = por %p453_p1, %p452_p0 }
  0x1a   : > { %v139_v10 = vsel %vm123_vm0, %v120_v8, 0.0  ;;  %v142_v15 = vsel %vm123_vm0, %v121_v13, 0.0 }
  0x1b   : > { %p455_p3 = pnand %p454_p2, %p448_p13 }
  0x1d   : > { %134 = vadd.xlane.f32.xlu1 %v133_v6  ;;  %128 = vadd.xlane.f32.xlu0 %v127_v7 }
  0x21   : > { %140 = vadd.xlane.f32.xlu1 %v139_v10  ;;  %137 = vadd.xlane.f32.xlu0 %v136_v11 }
  0x25   : > { %146 = vadd.xlane.f32.xlu1 %v145_v14  ;;  %143 = vadd.xlane.f32.xlu0 %v142_v15 }
  0xa2   : > { %v132_v16 = vpop.xlane.xlu1 %131  ;;  %v126_v17 = vpop.xlane.xlu0 %125 }
  0xa3   : > { %v148_v18 = vmul.f32 0.0625, %v126_v17  ;;  %v150_v22 = vmul.f32 0.0625, %v132_v16 }
  0xa5   : > { %v156_v19 = vsub.f32 %v115_v1, %v148_v18  ;;  %v158_v28 = vsub.f32 %v117_v0, %v150_v22 }
  0xa6   : > { %v135_v20 = vpop.xlane.xlu1 %134  ;;  %v129_v21 = vpop.xlane.xlu0 %128 }
  0xa7   : > { %v149_v23 = vmul.f32 0.0625, %v129_v21  ;;  %164 = vxpose.xlu0.b32.start [1/8] (short) (narrow) %v156_v19, 16  ;;  %v151_v25 = vmul.f32 0.0625, %v135_v20 }
  0xa9   : > { %v157_v24 = vsub.f32 %v116_v5, %v149_v23  ;;  %v159_v29 = vsub.f32 %v118_v2, %v151_v25 }
  0xaa   : > { %v141_v26 = vpop.xlane.xlu1 %140  ;;  %v138_v27 = vpop.xlane.xlu0 %137 }
  0xab   : > { %165 = vxpose.xlu0.b32.cont [2/8] (short) (narrow) %v157_v24, 16  ;;  %v153_v32 = vmul.f32 0.0625, %v141_v26  ;;  %v152_v33 = vmul.f32 0.0625, %v138_v27 }
  0xad   : > { %v161_v38 = vsub.f32 %v120_v8, %v153_v32  ;;  %v160_v39 = vsub.f32 %v119_v9, %v152_v33 }
  0xae   : > { %v147_v30 = vpop.xlane.xlu1 %146  ;;  %v144_v31 = vpop.xlane.xlu0 %143 }
  0xaf   : > { %v155_v34 = vmul.f32 0.0625, %v147_v30  ;;  %166 = vxpose.xlu0.b32.cont [3/8] (short) (narrow) %v158_v28, 16  ;;  %v154_v35 = vmul.f32 0.0625, %v144_v31 }
  0xb1   : > { %v163_v36 = vsub.f32 %v122_v12, %v155_v34  ;;  %v162_v37 = vsub.f32 %v121_v13, %v154_v35 }
  0xb3   : > { %384 = vmatprep.subr.mxu0 %v163_v36  ;;  %167 = vxpose.xlu0.b32.cont [4/8] (short) (narrow) %v159_v29, 16 }
  0xb4   : > { %385 = vmatpush3.msra.mxu0 %v163_v36 }
  0xb5   : > { %386 = vmatprep.subr.mxu0 %v162_v37 }
  0xb6   : > { %387 = vmatpush3.msra.mxu0 %v162_v37 }
  0xb7   : > { %168 = vxpose.xlu0.b32.cont [5/8] (short) (narrow) %v160_v39, 16  ;;  %388 = vmatprep.subr.mxu0 %v161_v38 }
  0xb8   : > { %389 = vmatpush3.msra.mxu0 %v161_v38 }
  0xb9   : > { %390 = vmatprep.subr.mxu0 %v160_v39 }
  0xba   : > { %391 = vmatpush3.msra.mxu0 %v160_v39 }
  0xbb   : > { %169 = vxpose.xlu0.b32.cont [6/8] (short) (narrow) %v161_v38, 16  ;;  %392 = vmatprep.subr.mxu0 %v159_v29 }
  0xbc   : > { %393 = vmatpush3.msra.mxu0 %v159_v29 }
  0xbd   : > { %394 = vmatprep.subr.mxu0 %v158_v28 }
  0xbe   : > { %395 = vmatpush3.msra.mxu0 %v158_v28 }
  0xbf   : > { %170 = vxpose.xlu0.b32.cont [7/8] (short) (narrow) %v162_v37, 16  ;;  %396 = vmatprep.subr.mxu0 %v157_v24 }
  0xc0   : > { %397 = vmatpush3.msra.mxu0 %v157_v24 }
  0xc1   : > { %398 = vmatprep.subr.mxu0 %v156_v19 }
  0xc2   : > { %399 = vmatpush3.msra.mxu0 %v156_v19 }
  0xc3   : > { %171 = vxpose.xlu0.b32.end [8/8] (short) (narrow) %v163_v36, 16 }
 0x123   : > { %v180_v40 = vpop.trf.xlu0 }
 0x124   : > { %400 = vmatprep.mubr.msk.f32.mxu0 %vm196_vm1, %v180_v40 }
 0x127   : > { %v181_v41 = vpop.trf.xlu0 }
 0x128   : > { %401 = vmatmul.mubr.msk.f32.vlgmr.msra.gmra.mxu0 %vm196_vm1, %v181_v41 }
 0x1e8   : > { %v402_v42 = vpop.f32.mrf.mxu0 }
 0x1e9   : > { %v279_v43 = vmul.f32 0.0078125, %v402_v42 }
 0x1ea   : > { %v269_v44 = vpop.f32.mrf.mxu0 }
 0x1eb   : > { %281 = vst.msk [vmem:[%s109_s25 + $0x8] sm:$0xff] %vm123_vm0, %v279_v43  ;;  %v278_v45 = vmul.f32 0.0078125, %v269_v44 }
 0x1ed   : > { %280 = vst.msk [vmem:[%s109_s25] sm:$0xff] %vm123_vm0, %v278_v45 }
 0x1ee   : > { %458 = shalt.err (!%p455_p3)
}
 0x1ef   : > { %s459_s11 = scalar_lea.hbm %s588_s30, 256  ;;  %s463_s18 = scalar_lea.hbm %s633_s1, 512 }
 0x1f0   : > { %p460_p4 = scmp.ne.s32.totalorder %s588_s30, %s459_s11  ;;  %p464_p9 = scmp.lt.s32.totalorder %s588_s30, %s633_s1 }
 0x1f1   : > { %p465_p10 = scmp.lt.s32.totalorder %s463_s18, %s459_s11 }
 0x1f2   : > { %p461_p7 = pnand %p460_p4, %p558_p5 }
 0x1f3   : > { %p466_p11 = por %p465_p10, %p464_p9 }
 0x1f4   : > { %p462_p8 = pneg %p461_p7 }
 0x1f6   : > { %p467_p12 = pnand %p466_p11, %p462_p8 }
 0x1f8   : > { %470 = shalt.err (!%p467_p12)
}
 0x1f9   : > { %s508_s21 = smov 128   ;;  %s509_s22 = smov 8  }
 0x1fa   : > { %403 = dma.vmem_to_hbm [thread:$0]  (%p558_p5), %s583_s26, 256, %s588_s30, %s592_s2, %s508_s21, %s508_s21, %s509_s22  }
 0x1fb PF: > { %p409_p13 = scmp.ge.s32.totalorder %s505_s9, 2  ;;  %s311_s23 = sand.u32 1, %s493_s6  }
 0x1fc   : > { %s312_s24 = scalar_lea.sflag [#allocation3], %s311_s23 }
 0x1fd   : > { %p406_p0 = pnand %p409_p13, %p562_p6 }
 0x1ff   : > { %p407_p1 = pneg %p406_p0 }
 0x201   : > { %488 = dma.done.wait (%p407_p1), %s312_s24, 256  }
 0x202   : > { %490 = vsyncadd (%p407_p1), %s312_s24, 4294967040  ;;  %p11_p2 = scmp.ge.s32.totalorder %s545_s12, 4   ;;  %s636_s6 = smov %s497_s7 }
 0x203   : > { %s637_s7 = smov %s501_s8  ;;  %s638_s8 = smov %s556_s15 }
 0x204   : > { %s639_s9 = smov %s545_s12  ;;  %13 = sbr.rel (!%p11_p2) target bundleno = 3 (0x3), region = 59 }
 0x209   :  { %317 = vsyncpa [#allocation3], 1 }
 0x20a   :  { %319 = vsyncpa [#allocation3 + $0x1], 1 }

</bundles_post_ra>
